<compile_context>
chip_gen: v5e
topology: v5e:2x2
jax: 0.10.0
libtpu: 0.0.40
codegen_flags: <defaults>
</compile_context>

<pallas_src>
import jax
import jax.numpy as jnp
from jax.experimental import pallas as pl
from jax.experimental.pallas import tpu as pltpu


def _linear_kernel(x_ref, wt_ref, b_ref, o_ref):
    # x_ref : (TILE_B, F)  streamed per grid step
    # wt_ref: (F, L)       resident across the grid (constant index_map)
    # b_ref : (1, L)       resident
    # o_ref : (TILE_B, L)
    acc = jnp.dot(x_ref[...], wt_ref[...], preferred_element_type=jnp.float32)
    o_ref[...] = (acc + b_ref[...]).astype(o_ref.dtype)


def _round_up(n, m):
    return ((n + m - 1) // m) * m


def dual_loss_regression_forward(x, weight, bias, *, tile_b=4096,
                                 pallas_min_batch=1024, force_pallas=False):
    """y = x @ weight.T + bias, matching torch.nn.Linear.

    x: (B, F) f32, weight: (L, F) f32 (PyTorch layout), bias: (L,) f32.
    """
    B, F = x.shape
    L, Fw = weight.shape
    assert F == Fw and bias.shape == (L,)

    if not force_pallas and B < pallas_min_batch:
        # Tiny-batch path: let XLA fuse; a standalone pallas_call launch costs
        # far more than the handful of MACs involved.
        return x @ weight.T + bias

    # Batch tile: multiple of 8 (f32 sublane). For larger batches, cap at
    # ~B/2 so the grid has >= 2 "parallel" steps (lets v7x use both TCs);
    # ragged last block is handled by Pallas's masked writeback.
    if B >= 16:
        TILE_B = min(tile_b, _round_up(pl.cdiv(B, 2), 8))
    else:
        TILE_B = _round_up(B, 8)
    grid = (pl.cdiv(B, TILE_B),)

    w_t = weight.T              # one-time (F, L) transpose: plain NN matmul in-kernel
    b2d = bias.reshape(1, L)

    return pl.pallas_call(
        _linear_kernel,
        out_shape=jax.ShapeDtypeStruct((B, L), x.dtype),
        grid_spec=pltpu.PrefetchScalarGridSpec(
            num_scalar_prefetch=0,
            grid=grid,
            in_specs=[
                pl.BlockSpec((TILE_B, F), lambda i: (i, 0)),  # x: streamed per step
                pl.BlockSpec((F, L), lambda i: (0, 0)),       # W^T: resident in VMEM
                pl.BlockSpec((1, L), lambda i: (0, 0)),       # bias: resident
            ],
            out_specs=pl.BlockSpec((TILE_B, L), lambda i: (i, 0)),
        ),
        compiler_params=pltpu.CompilerParams(
            dimension_semantics=("parallel",),  # batch axis -> both TCs on v7x
        ),
    )(x, w_t, b2d)


if __name__ == "__main__":
    # Small shapes implied by the module: num_features=32, num_loss=4, batch=8.
    batch, num_features, num_loss = 8, 32, 4

    key = jax.random.PRNGKey(0)
    kx, kw, kb, kx2 = jax.random.split(key, 4)

    # Deterministic init mimicking nn.Linear defaults: U(-1/sqrt(fan_in), 1/sqrt(fan_in)).
    bound = 1.0 / (num_features ** 0.5)
    weight = jax.random.uniform(kw, (num_loss, num_features), jnp.float32, -bound, bound)
    bias = jax.random.uniform(kb, (num_loss,), jnp.float32, -bound, bound)
    x = jax.random.normal(kx, (batch, num_features), jnp.float32)

    # Force the Pallas path on the module's small shapes (correctness check).
    y = dual_loss_regression_forward(x, weight, bias, force_pallas=True)
    y = jax.block_until_ready(y)
    y_ref = x @ weight.T + bias
    assert y.shape == (batch, num_loss)
    assert jnp.allclose(y, y_ref, atol=1e-5, rtol=1e-5)

    # Exercise the multi-tile + ragged-last-block path (B not a multiple of TILE_B).
    x2 = jax.random.normal(kx2, (1000, num_features), jnp.float32)
    y2 = dual_loss_regression_forward(x2, weight, bias, tile_b=512, force_pallas=True)
    y2 = jax.block_until_ready(y2)
    y2_ref = x2 @ weight.T + bias
    assert y2.shape == (1000, num_loss)
    assert jnp.allclose(y2, y2_ref, atol=1e-5, rtol=1e-5)

    # Auto-dispatch path: small batch falls back to the plain fused XLA op.
    y3 = dual_loss_regression_forward(x, weight, bias)
    y3 = jax.block_until_ready(y3)
    assert jnp.allclose(y3, y_ref, atol=1e-5, rtol=1e-5)

    print("KERNEL_OK")
</pallas_src>

<mosaic_0001>
module attributes {stable_mosaic.version = 11 : i64} {
  func.func @_linear_kernel(%arg0: i32, %arg1: memref<8x32xf32, #tpu.memory_space<vmem>>, %arg2: memref<32x4xf32, #tpu.memory_space<vmem>>, %arg3: memref<1x4xf32, #tpu.memory_space<vmem>>, %arg4: memref<8x4xf32, #tpu.memory_space<vmem>>) attributes {dimension_semantics = [#tpu.dimension_semantics<parallel>], iteration_bounds = array<i64: 1>, scalar_prefetch = 0 : i64, scratch_operands = 0 : i64, tpu.core_type = #tpu.core_type<tc>, window_params = [{transform_indices = @transform_0, window_bounds = array<i64: 8, 32>}, {pipeline_mode = #tpu.pipeline_mode<synchronous>, transform_indices = @transform_1, window_bounds = array<i64: 32, 4>}, {pipeline_mode = #tpu.pipeline_mode<synchronous>, transform_indices = @transform_2, window_bounds = array<i64: 1, 4>}, {transform_indices = @transform_3, window_bounds = array<i64: 8, 4>}]} {
    %c0 = arith.constant 0 : index
    %c0_0 = arith.constant 0 : index
    %0 = vector.load %arg1[%c0, %c0_0] : memref<8x32xf32, #tpu.memory_space<vmem>>, vector<8x32xf32>
    %c0_1 = arith.constant 0 : index
    %c0_2 = arith.constant 0 : index
    %1 = vector.load %arg2[%c0_1, %c0_2] : memref<32x4xf32, #tpu.memory_space<vmem>>, vector<32x4xf32>
    %cst = arith.constant dense<0.000000e+00> : vector<8x4xf32>
    %2 = tpu.matmul %0, %1, %cst {dimension_numbers = #tpu.dot_dimension_numbers<[1], [0], [0], [1], [0, 0, 1, 1], [], []>} : vector<8x32xf32>, vector<32x4xf32>, vector<8x4xf32> -> vector<8x4xf32>
    %c0_3 = arith.constant 0 : index
    %c0_4 = arith.constant 0 : index
    %3 = vector.load %arg3[%c0_3, %c0_4] : memref<1x4xf32, #tpu.memory_space<vmem>>, vector<1x4xf32>
    %4 = vector.broadcast %3 : vector<1x4xf32> to vector<8x4xf32>
    %5 = arith.addf %2, %4 : vector<8x4xf32>
    %c0_5 = arith.constant 0 : index
    %c0_6 = arith.constant 0 : index
    %6 = vector.load %arg4[%c0_5, %c0_6] : memref<8x4xf32, #tpu.memory_space<vmem>>, vector<8x4xf32>
    tpu.vector_store %arg4[%c0_5, %c0_6], %5 {strides = array<i32>} : memref<8x4xf32, #tpu.memory_space<vmem>>, vector<8x4xf32>,
    return
  }
  func.func @transform_0(%arg0: i32) -> (i32, i32) {
    %c0_i32 = arith.constant 0 : i32
    %c0_i32_0 = arith.constant 0 : i32
    return %arg0, %c0_i32 : i32, i32
  }
  func.func @transform_1(%arg0: i32) -> (i32, i32) {
    %c0_i32 = arith.constant 0 : i32
    %c0_i32_0 = arith.constant 0 : i32
    %c0_i32_1 = arith.constant 0 : i32
    return %c0_i32, %c0_i32_0 : i32, i32
  }
  func.func @transform_2(%arg0: i32) -> (i32, i32) {
    %c0_i32 = arith.constant 0 : i32
    %c0_i32_0 = arith.constant 0 : i32
    %c0_i32_1 = arith.constant 0 : i32
    return %c0_i32, %c0_i32_0 : i32, i32
  }
  func.func @transform_3(%arg0: i32) -> (i32, i32) {
    %c0_i32 = arith.constant 0 : i32
    %c0_i32_0 = arith.constant 0 : i32
    return %arg0, %c0_i32 : i32, i32
  }
}

</mosaic_0001>

<bundles_post_ra>
// kernel: tpu_custom_call.1
= control target key start
LH: loop header
LB: loop body
LE: loop exit
PB: predicated region body
PF: predicated region fallthrough
CT: control target
= control target key end

     0   :  { %vm23_vm0 = vcmask 261120   ;;  %vm47_vm1 = vcmask 31744   ;;  %s96_s1 = inlined_call_operand.vmem [shape: f32[32,4], index: 1, kind: input, shape index: {}]   ;;  %s97_s2 = inlined_call_operand.vmem [shape: f32[1,4], index: 2, kind: input, shape index: {}]   ;;  %s98_s0 = inlined_call_operand.vmem [shape: f32[8,32], index: 0, kind: input, shape index: {}]   ;;  %s99_s3 = inlined_call_operand.vmem [shape: f32[8,4], index: 3, kind: output, shape index: {}]  }
   0x1   :  { %v18_v0 = vld [vmem:[%s96_s1 + $0x18] sm:$0xff]  ;;  %v17_v1 = vld [vmem:[%s96_s1 + $0x10] sm:$0xff]  ;;  %v16_v2 = vld [vmem:[%s96_s1 + $0x8] sm:$0xff] }
   0x2   :  { %39 = vmatpush.msra.mxu0 %v18_v0  ;;  %v15_v3 = vld [vmem:[%s96_s1] sm:$0xff] }
   0x3   :  { %v14_v4 = vld [vmem:[%s98_s0] sm:$0xff] }
   0x4   :  { %40 = vmatpush.msra.mxu0 %v17_v1  ;;  %v54_v5 = vld [vmem:[%s97_s2] ss:$0 sm:$0xff] }
   0x6   :  { %41 = vmatpush.msra.mxu0 %v16_v2 }
   0x8   :  { %42 = vmatpush.msra.mxu0 %v15_v3 }
   0x9   :  { %53 = vmatmul.msk.f32.vlgmr.msra.gmra.mxu0 %vm23_vm0, %v14_v4 }
  0x86   :  { %v44_v6 = vpop.f32.mrf.mxu0 }
  0x87   :  { %v45_v7 = vadd.f32 %v54_v5, %v44_v6 }
  0x89   :  { %48 = vst.msk [vmem:[%s99_s3] sm:$0xff] %vm47_vm1, %v45_v7 }

</bundles_post_ra>
